<compile_context>
chip_gen: v7x
topology: tpu7x:2x2x1
jax: 0.10.0
libtpu: 0.0.40
codegen_flags: <defaults>
</compile_context>

<pallas_src>
import functools

import jax
import jax.numpy as jnp
from jax.experimental import pallas as pl
from jax.experimental.pallas import tpu as pltpu

ALPHA = 0.25      # unused in forward (kept for parity with the module)
GAMMA = 2.0
EPS = 1e-6


def _round_up(x, m):
    return ((x + m - 1) // m) * m


def _default_block_bytes():
    """Per-input block-size default, tuned per TPU generation (best effort)."""
    try:
        kind = jax.devices()[0].device_kind.lower()
    except Exception:
        return 4 * 1024 * 1024
    if "v6" in kind:
        # 128 MiB VMEM + slower HBM than v7x -> bigger blocks amortize the
        # ~0.35 us/step pipeline overhead further.
        return 8 * 1024 * 1024
    # v5e (scoped default VMEM is small; already overhead-insensitive) and v7x
    # (only 64 MiB VMEM/TC, 2x2-buffered inputs + output must stay well under).
    return 4 * 1024 * 1024


def _focal_loss_kernel(x_ref, y_ref, out_ref, *, gamma, num_classes, fold,
                       n_valid_rows, block_rows):
    """One tile of folded rows.

    x_ref / y_ref : (block_rows, fold*num_classes) -- `fold` original rows per
                    block row, laid out consecutively along the lane axis.
    out_ref       : (block_rows, 1) -- sum of the `fold` per-row focal losses
                    of each folded block row.
    """
    c = num_classes
    x = x_ref[...].astype(jnp.float32)
    y = y_ref[...].astype(jnp.float32)

    # Element-wise work on lane-dense vregs (VPU).
    z = jnp.clip(x, EPS, 1.0 - EPS) * y                      # (tm, fold*c)

    # Exact-f32 segmented per-row class sum.  Done as `fold` masked full-lane
    # reductions (XLU, which is otherwise idle here) -- no MXU, no bf16
    # rounding, no hi/lo split, no per-step fold-matrix rebuild.
    if fold == 1:
        pt = jnp.sum(z, axis=-1, keepdims=True)              # (tm, 1)
    else:
        cp = fold * c
        lane = jax.lax.broadcasted_iota(jnp.int32, (1, cp), 1)
        pts = []
        for j in range(fold):
            in_seg = (lane >= j * c) & (lane < (j + 1) * c)  # (1, cp) mask
            zj = jnp.where(in_seg, z, 0.0)
            pts.append(jnp.sum(zj, axis=-1, keepdims=True))  # (tm, 1)
        pt = jnp.concatenate(pts, axis=-1)                   # (tm, fold)

    one_minus = 1.0 - pt
    g = float(gamma)
    if g == 2.0:
        focal = one_minus * one_minus        # VPU multiply; keeps the EUP free
    elif g.is_integer() and g >= 0.0:
        gi = int(g)
        focal = jnp.ones_like(one_minus) if gi == 0 else one_minus
        for _ in range(max(gi - 1, 0)):
            focal = focal * one_minus
    else:
        focal = jnp.power(one_minus, jnp.float32(g))   # general non-integer path

    loss = -focal * jnp.log(pt)                              # (tm, fold)

    # Ragged tail handling (no wrapper-side padding): rows of the last tile
    # beyond the logical end of the input hold stale VMEM data.  Their output
    # writeback is clipped by Pallas anyway; mask them so the stored block is
    # deterministic.  Only traced when the grid is actually ragged.
    if n_valid_rows % block_rows != 0:
        row = (pl.program_id(0) * block_rows
               + jax.lax.broadcasted_iota(jnp.int32, loss.shape, 0))
        loss = jnp.where(row < n_valid_rows, loss, 0.0)

    # In-kernel reduction down to one value per folded row: the HBM writeback
    # is (N/fold, 1) and the wrapper-side mean/sum is a tiny reduction.
    out_ref[...] = jnp.sum(loss, axis=-1, keepdims=True).astype(out_ref.dtype)


def focal_loss_v1(logits, label, *, alpha=ALPHA, gamma=GAMMA, reduction="mean",
                  block_rows=None, target_block_bytes=None):
    """Pallas TPU implementation of FocalLossV1.forward."""
    del alpha  # unused in the reference forward pass
    assert logits.shape == label.shape and logits.ndim == 2
    n, c = logits.shape
    assert n >= 1 and c >= 1

    # ---- fold k consecutive rows onto the 128-lane axis when C is small ----
    # (lane-dense vregs / VMEM / DMA).  fold must divide N exactly so the
    # reshape below is a free row-major re-view -- never a padding copy.
    if reduction == "none" or 128 % c != 0:
        fold = 1
    else:
        fold = min(128 // c, 16)          # bound the unrolled per-segment loop
        while fold > 1 and n % fold != 0:
            fold //= 2
    cp = fold * c
    nr = n // fold                        # folded rows (exact by construction)

    x = logits.reshape(nr, cp)            # free reshape: same row-major bytes
    y = label.reshape(nr, cp)

    # ---- tile sizing ----
    itemsize = max(jnp.dtype(logits.dtype).itemsize,
                   jnp.dtype(label.dtype).itemsize)
    if target_block_bytes is None:
        target_block_bytes = _default_block_bytes()
    if block_rows is None:
        tm = max(8, (target_block_bytes // (cp * itemsize)) // 8 * 8)
    else:
        tm = max(8, _round_up(block_rows, 8))
    # Keep >=2 grid tiles whenever the data allows it, so v7x can shard the
    # fully parallel row axis across its two TensorCores (no-op on v5e/v6e).
    tm = min(tm, _round_up(pl.cdiv(nr, 2), 8), _round_up(nr, 8))
    num_tiles = pl.cdiv(nr, tm)

    # VMEM working set: 2 inputs x 2 pipeline buffers x (tm, cp) blocks plus the
    # lane-padded, double-buffered (tm, 1) output block.  Keep the limit above
    # that with headroom but well below v7x's 64 MiB VMEM.
    in_buf = tm * max(cp, 128) * itemsize
    out_buf = tm * 128 * 4
    working = 4 * in_buf + 2 * out_buf
    vmem_limit = int(min(max(working + 16 * 1024 * 1024, 32 * 1024 * 1024),
                         64 * 1024 * 1024))

    kernel = functools.partial(
        _focal_loss_kernel, gamma=float(gamma), num_classes=c, fold=fold,
        n_valid_rows=nr, block_rows=tm)

    row_sums = pl.pallas_call(
        kernel,
        out_shape=jax.ShapeDtypeStruct((nr, 1), jnp.float32),
        grid_spec=pltpu.PrefetchScalarGridSpec(
            num_scalar_prefetch=0,
            grid=(num_tiles,),
            in_specs=[
                pl.BlockSpec((tm, cp), lambda i: (i, 0)),
                pl.BlockSpec((tm, cp), lambda i: (i, 0)),
            ],
            out_specs=pl.BlockSpec((tm, 1), lambda i: (i, 0)),
        ),
        compiler_params=pltpu.CompilerParams(
            # No cross-tile carry -> fully parallel row axis (2 TCs on v7x).
            dimension_semantics=("parallel",),
            vmem_limit_bytes=vmem_limit,
        ),
    )(x, y)

    if reduction == "mean":
        return (jnp.sum(row_sums) / n).astype(logits.dtype)
    if reduction == "sum":
        return jnp.sum(row_sums).astype(logits.dtype)
    # reduction == 'none': fold == 1, so row_sums already holds per-row losses.
    return row_sums.reshape(-1).astype(logits.dtype)


# ----------------------------- reference (JAX) ------------------------------
def _reference_rows(logits, label, gamma=GAMMA):
    x = jnp.clip(logits, EPS, 1.0 - EPS)
    pt = jnp.sum(x * label, axis=-1)
    return -1.0 * jnp.power(1.0 - pt, gamma) * jnp.log(pt)


def _reference_mean(logits, label, gamma=GAMMA):
    return jnp.mean(_reference_rows(logits, label, gamma))


if __name__ == "__main__":
    key = jax.random.PRNGKey(0)
    k1, k2 = jax.random.split(key)

    # Small shapes; N deliberately not a multiple of the tile so the ragged
    # (un-padded) tail path is exercised.
    N, C = 100, 32
    logits = jax.nn.softmax(jax.random.normal(k1, (N, C), dtype=jnp.float32), axis=-1)
    cls = jax.random.randint(k2, (N,), 0, C)
    label = jax.nn.one_hot(cls, C, dtype=jnp.float32)

    out = focal_loss_v1(logits, label)                       # fold=4, 2 tiles
    out_tiled = focal_loss_v1(logits, label, block_rows=8)   # multi-tile grid
    out_none = focal_loss_v1(logits, label, reduction="none")

    # Odd batch + class count that does not divide 128 -> fold=1 fallback path.
    N2, C2 = 53, 10
    logits2 = jax.nn.softmax(jax.random.normal(k1, (N2, C2), dtype=jnp.float32), axis=-1)
    label2 = jax.nn.one_hot(jax.random.randint(k2, (N2,), 0, C2), C2, dtype=jnp.float32)
    out2 = focal_loss_v1(logits2, label2)

    jax.block_until_ready((out, out_tiled, out_none, out2))

    ref = _reference_mean(logits, label)
    ref_none = _reference_rows(logits, label)
    ref2 = _reference_mean(logits2, label2)
    assert jnp.allclose(out, ref, rtol=1e-5, atol=1e-6), (out, ref)
    assert jnp.allclose(out_tiled, ref, rtol=1e-5, atol=1e-6), (out_tiled, ref)
    assert jnp.allclose(out_none, ref_none, rtol=1e-5, atol=1e-6)
    assert jnp.allclose(out2, ref2, rtol=1e-5, atol=1e-6), (out2, ref2)
    print("KERNEL_OK")
</pallas_src>

<mosaic_0001>
module attributes {stable_mosaic.version = 11 : i64} {
  func.func @_focal_loss_kernel(%arg0: i32, %arg1: memref<16x128xf32, #tpu.memory_space<vmem>>, %arg2: memref<16x128xf32, #tpu.memory_space<vmem>>, %arg3: memref<16x1xf32, #tpu.memory_space<vmem>>) attributes {dimension_semantics = [#tpu.dimension_semantics<parallel>], iteration_bounds = array<i64: 2>, scalar_prefetch = 0 : i64, scratch_operands = 0 : i64, tpu.core_type = #tpu.core_type<tc>, window_params = [{transform_indices = @transform_0, window_bounds = array<i64: 16, 128>}, {transform_indices = @transform_1, window_bounds = array<i64: 16, 128>}, {transform_indices = @transform_2, window_bounds = array<i64: 16, 1>}]} {
    %c0 = arith.constant 0 : index
    %c0_0 = arith.constant 0 : index
    %0 = vector.load %arg1[%c0, %c0_0] : memref<16x128xf32, #tpu.memory_space<vmem>>, vector<16x128xf32>
    %c0_1 = arith.constant 0 : index
    %c0_2 = arith.constant 0 : index
    %1 = vector.load %arg2[%c0_1, %c0_2] : memref<16x128xf32, #tpu.memory_space<vmem>>, vector<16x128xf32>
    %cst = arith.constant 9.99999997E-7 : f32
    %cst_3 = arith.constant 0.999998986 : f32
    %2 = vector.broadcast %cst : f32 to vector<16x128xf32>
    %3 = arith.maximumf %2, %0 : vector<16x128xf32>
    %4 = vector.broadcast %cst_3 : f32 to vector<16x128xf32>
    %5 = arith.minimumf %4, %3 : vector<16x128xf32>
    %6 = arith.mulf %5, %1 : vector<16x128xf32>
    %7 = tpu.iota {dimensions = array<i32: 1>} : vector<1x128xi32>
    %c0_i32 = arith.constant 0 : i32
    %8 = vector.broadcast %c0_i32 : i32 to vector<1x128xi32>
    %9 = arith.cmpi sge, %7, %8 : vector<1x128xi32>
    %c32_i32 = arith.constant 32 : i32
    %10 = vector.broadcast %c32_i32 : i32 to vector<1x128xi32>
    %11 = arith.cmpi slt, %7, %10 : vector<1x128xi32>
    %12 = arith.andi %9, %11 : vector<1x128xi1>
    %cst_4 = arith.constant 0.000000e+00 : f32
    %13 = vector.shape_cast %12 : vector<1x128xi1> to vector<1x128xi1>
    %14 = vector.broadcast %13 : vector<1x128xi1> to vector<16x128xi1>
    %15 = vector.broadcast %cst_4 : f32 to vector<16x128xf32>
    %16 = arith.select %14, %6, %15 : vector<16x128xi1>, vector<16x128xf32>
    %cst_5 = arith.constant dense<0.000000e+00> : vector<16xf32>
    %17 = vector.multi_reduction <add>, %16, %cst_5 [1] : vector<16x128xf32> to vector<16xf32>
    %18 = vector.shape_cast %17 : vector<16xf32> to vector<16x1xf32>
    %c32_i32_6 = arith.constant 32 : i32
    %19 = vector.broadcast %c32_i32_6 : i32 to vector<1x128xi32>
    %20 = arith.cmpi sge, %7, %19 : vector<1x128xi32>
    %c64_i32 = arith.constant 64 : i32
    %21 = vector.broadcast %c64_i32 : i32 to vector<1x128xi32>
    %22 = arith.cmpi slt, %7, %21 : vector<1x128xi32>
    %23 = arith.andi %20, %22 : vector<1x128xi1>
    %cst_7 = arith.constant 0.000000e+00 : f32
    %24 = vector.shape_cast %23 : vector<1x128xi1> to vector<1x128xi1>
    %25 = vector.broadcast %24 : vector<1x128xi1> to vector<16x128xi1>
    %26 = vector.broadcast %cst_7 : f32 to vector<16x128xf32>
    %27 = arith.select %25, %6, %26 : vector<16x128xi1>, vector<16x128xf32>
    %cst_8 = arith.constant dense<0.000000e+00> : vector<16xf32>
    %28 = vector.multi_reduction <add>, %27, %cst_8 [1] : vector<16x128xf32> to vector<16xf32>
    %29 = vector.shape_cast %28 : vector<16xf32> to vector<16x1xf32>
    %c64_i32_9 = arith.constant 64 : i32
    %30 = vector.broadcast %c64_i32_9 : i32 to vector<1x128xi32>
    %31 = arith.cmpi sge, %7, %30 : vector<1x128xi32>
    %c96_i32 = arith.constant 96 : i32
    %32 = vector.broadcast %c96_i32 : i32 to vector<1x128xi32>
    %33 = arith.cmpi slt, %7, %32 : vector<1x128xi32>
    %34 = arith.andi %31, %33 : vector<1x128xi1>
    %cst_10 = arith.constant 0.000000e+00 : f32
    %35 = vector.shape_cast %34 : vector<1x128xi1> to vector<1x128xi1>
    %36 = vector.broadcast %35 : vector<1x128xi1> to vector<16x128xi1>
    %37 = vector.broadcast %cst_10 : f32 to vector<16x128xf32>
    %38 = arith.select %36, %6, %37 : vector<16x128xi1>, vector<16x128xf32>
    %cst_11 = arith.constant dense<0.000000e+00> : vector<16xf32>
    %39 = vector.multi_reduction <add>, %38, %cst_11 [1] : vector<16x128xf32> to vector<16xf32>
    %40 = vector.shape_cast %39 : vector<16xf32> to vector<16x1xf32>
    %c96_i32_12 = arith.constant 96 : i32
    %41 = vector.broadcast %c96_i32_12 : i32 to vector<1x128xi32>
    %42 = arith.cmpi sge, %7, %41 : vector<1x128xi32>
    %c128_i32 = arith.constant 128 : i32
    %43 = vector.broadcast %c128_i32 : i32 to vector<1x128xi32>
    %44 = arith.cmpi slt, %7, %43 : vector<1x128xi32>
    %45 = arith.andi %42, %44 : vector<1x128xi1>
    %cst_13 = arith.constant 0.000000e+00 : f32
    %46 = vector.shape_cast %45 : vector<1x128xi1> to vector<1x128xi1>
    %47 = vector.broadcast %46 : vector<1x128xi1> to vector<16x128xi1>
    %48 = vector.broadcast %cst_13 : f32 to vector<16x128xf32>
    %49 = arith.select %47, %6, %48 : vector<16x128xi1>, vector<16x128xf32>
    %cst_14 = arith.constant dense<0.000000e+00> : vector<16xf32>
    %50 = vector.multi_reduction <add>, %49, %cst_14 [1] : vector<16x128xf32> to vector<16xf32>
    %51 = vector.shape_cast %50 : vector<16xf32> to vector<16x1xf32>
    %52 = tpu.concatenate %18, %29, %40, %51 in 1 : vector<16x1xf32>, vector<16x1xf32>, vector<16x1xf32>, vector<16x1xf32> -> vector<16x4xf32>
    %cst_15 = arith.constant 1.000000e+00 : f32
    %53 = vector.broadcast %cst_15 : f32 to vector<16x4xf32>
    %54 = arith.subf %53, %52 : vector<16x4xf32>
    %55 = arith.mulf %54, %54 : vector<16x4xf32>
    %cst_16 = arith.constant 0.000000e+00 : f32
    %56 = vector.broadcast %cst_16 : f32 to vector<16x4xf32>
    %57 = arith.subf %56, %55 : vector<16x4xf32>
    %58 = math.log %52 : vector<16x4xf32>
    %59 = arith.mulf %57, %58 : vector<16x4xf32>
    %c16_i32 = arith.constant 16 : i32
    %60 = arith.muli %arg0, %c16_i32 : i32
    %61 = tpu.iota {dimensions = array<i32: 0>} : vector<16x4xi32>
    %62 = vector.broadcast %60 : i32 to vector<16x4xi32>
    %63 = arith.addi %62, %61 : vector<16x4xi32>
    %c25_i32 = arith.constant 25 : i32
    %64 = vector.broadcast %c25_i32 : i32 to vector<16x4xi32>
    %65 = arith.cmpi slt, %63, %64 : vector<16x4xi32>
    %cst_17 = arith.constant 0.000000e+00 : f32
    %66 = vector.broadcast %cst_17 : f32 to vector<16x4xf32>
    %67 = arith.select %65, %59, %66 : vector<16x4xi1>, vector<16x4xf32>
    %cst_18 = arith.constant dense<0.000000e+00> : vector<16xf32>
    %68 = vector.multi_reduction <add>, %67, %cst_18 [1] : vector<16x4xf32> to vector<16xf32>
    %69 = vector.shape_cast %68 : vector<16xf32> to vector<16x1xf32>
    %c0_19 = arith.constant 0 : index
    %c0_20 = arith.constant 0 : index
    %70 = vector.load %arg3[%c0_19, %c0_20] : memref<16x1xf32, #tpu.memory_space<vmem>>, vector<16x1xf32>
    tpu.vector_store %arg3[%c0_19, %c0_20], %69 {strides = array<i32>} : memref<16x1xf32, #tpu.memory_space<vmem>>, vector<16x1xf32>,
    return
  }
  func.func @transform_0(%arg0: i32) -> (i32, i32) {
    %c0_i32 = arith.constant 0 : i32
    %c0_i32_0 = arith.constant 0 : i32
    return %arg0, %c0_i32 : i32, i32
  }
  func.func @transform_1(%arg0: i32) -> (i32, i32) {
    %c0_i32 = arith.constant 0 : i32
    %c0_i32_0 = arith.constant 0 : i32
    return %arg0, %c0_i32 : i32, i32
  }
  func.func @transform_2(%arg0: i32) -> (i32, i32) {
    %c0_i32 = arith.constant 0 : i32
    %c0_i32_0 = arith.constant 0 : i32
    return %arg0, %c0_i32 : i32, i32
  }
}

</mosaic_0001>

<bundles_post_ra>
// kernel: tpu_custom_call.1
= control target key start
LH: loop header
LB: loop body
LE: loop exit
PB: predicated region body
PF: predicated region fallthrough
CT: control target
= control target key end

     0   :  { %7 = vsyncpa [#allocation3], 0  ;;  %s755_s0 = inlined_call_operand.hbm [shape: f32[25,128], index: 0, kind: input, shape index: {}]   ;;  %s756_s1 = inlined_call_operand.hbm [shape: f32[25,128], index: 1, kind: input, shape index: {}]   ;;  %s757_s2 = inlined_call_operand.vmem [shape: f32[25,1], index: 2, kind: output, shape index: {}]  }
   0x1   :  { %9 = vsyncpa [#allocation3 + $0x1], 0 }
   0x2   :  { %10 = vsyncpa [#allocation5], 0 }
   0x3   :  { %12 = vsyncpa [#allocation5 + $0x1], 0  ;;  %s583_s9 = smov 0   ;;  %s585_s10 = smov 0  }
   0x4   :  { %s587_s11 = smov 0   ;;  %s589_s12 = smov 0  }
   0x5 LB: > { %s602_s13 = sadd.s32 4294967295, %s562_s12   ;;  %s605_s14 = sadd.s32 1, %s562_s12   ;;  %s562_s12 = sphi %s589_s12, %s767_s12   ;;  %s558_s11 = sphi %s587_s11, %s766_s11   ;;  %s554_s10 = sphi %s585_s10, %s765_s10   ;;  %s550_s9 = sphi %s583_s9, %s764_s9  }
   0x6   : > { %s22_s15 = ssub.s32 %s562_s12, %s605_s14  ;;  %s25_s16 = sadd.s32 1, %s558_s11 }
   0x7   : > { %p23_p0 = scmp.eq.s32.totalorder %s22_s15, 0  ;;  %p32_p1 = scmp.ne.s32.totalorder %s558_s11, %s554_s10 }
   0x8   : > { %p33_p2 = scmp.eq.s32.totalorder %s562_s12, 0  ;;  %p38_p3 = scmp.ne.s32.totalorder %s554_s10, %s550_s9 }
   0x9   : > { %s615_s17 = scalar_select %p23_p0, %s558_s11, %s25_s16  }
   0xa   : > { %p34_p4 = por %p33_p2, %p32_p1  ;;  %p39_p5 = scmp.eq.s32.totalorder %s602_s13, 0 }
   0xb   : > { %p425_p6 = scmp.lt.s32.totalorder %s562_s12, 2  ;;  %s624_s19 = sand.u32 1, %s558_s11  }
   0xc   : > { %p619_p7 = por %p39_p5, %p38_p3  ;;  %s398_s20 = sshll.u32 %s624_s19, 4 }
   0xd   : > { %s412_s21 = sshll.u32 %s562_s12, 8  ;;  %s118_s25 = scalar_lea.vmem [#allocation2], %s398_s20 }
   0xe   : > { %s759_s18 = scalar_select %p619_p7, 1, 0 }
   0xf   : > { %s633_s24 = scalar_lea.hbm %s755_s0, %s412_s21  ;;  %s125_s26 = sshll.u32 %s118_s25, 4  ;;  %s637_s26 = int_to_ptr.vmem [resolvable:$true] %s125_s26 }
  0x10   : > { %p639_p8 = pnand %p425_p6, %p34_p4  ;;  %s115_s28 = scalar_lea.sflag [#allocation3], %s624_s19 }
  0x11   : > { %s464_s29 = scalar_lea.hbm %s633_s24, 256  ;;  %s469_s4 = scalar_lea.hbm %s755_s0, 512 }
  0x12   : > { %p465_p10 = scmp.ne.s32.totalorder %s633_s24, %s464_s29  ;;  %p466_p11 = pneg %p639_p8 }
  0x13   : > { %p470_p0 = scmp.lt.u32.totalorder %s633_s24, %s755_s0  ;;  %p471_p1 = scmp.lt.u32.totalorder %s469_s4, %s464_s29 }
  0x14   : > { %p467_p12 = pnand %p466_p11, %p465_p10  ;;  %p473_p3 = scmp.lt.u32.totalorder %s464_s29, %s633_s24 }
  0x15   : > { %p472_p2 = por %p471_p1, %p470_p0 }
  0x16   : > { %p468_p13 = pneg %p467_p12 }
  0x17   : > { %p474_p4 = por %p473_p3, %p472_p2 }
  0x19   : > { %p475_p5 = pnand %p474_p4, %p468_p13 }
  0x1b   : > { %478 = shalt.err (!%p475_p5)
}
  0x1c   : > { %s479_s7 = scalar_lea.vmem %s637_s26, 256  ;;  %s564_s8 = smov [#allocation2]  }
  0x1d   : > { %p480_p6 = scmp.ne.s32.totalorder %s637_s26, %s479_s7  ;;  %s484_s9 = sshll.u32 %s564_s8, 4  ;;  %s485_s9 = int_to_ptr.vmem [resolvable:$false] %s484_s9 }
  0x1e   : > { %s486_s15 = scalar_lea.vmem %s485_s9, 512  ;;  %p487_p9 = scmp.lt.s32.totalorder %s637_s26, %s485_s9 }
  0x1f   : > { %p482_p10 = pnand %p480_p6, %p466_p11  ;;  %p488_p0 = scmp.lt.s32.totalorder %s486_s15, %s479_s7 }
  0x21   : > { %p483_p12 = pneg %p482_p10  ;;  %p489_p1 = por %p488_p0, %p487_p9 }
  0x23   : > { %p490_p2 = pnand %p489_p1, %p483_p12 }
  0x25   : > { %493 = shalt.err (!%p490_p2)
}
  0x26   : > { %s565_s16 = smov 128   ;;  %s566_s22 = smov 8  }
  0x27   : > { %421 = dma.hbm_to_vmem [thread:$0]  (!%p639_p8), %s633_s24, 256, %s637_s26, %s115_s28, %s565_s16, %s565_s16, %s566_s22  }
  0x28   : > { %p154_p9 = scmp.lt.s32.totalorder %s562_s12, 3  ;;  %s681_s29 = scalar_lea.hbm %s756_s1, %s412_s21 }
  0x29   : > { %p761_p13 = scmp.ge.s32.totalorder %s562_s12, 1  ;;  %s139_s3 = scalar_lea.vmem [#allocation4], %s398_s20 }
  0x2a   : > { %s146_s4 = sshll.u32 %s139_s3, 4  ;;  %s136_s24 = scalar_lea.sflag [#allocation5], %s624_s19  ;;  %s691_s4 = int_to_ptr.vmem [resolvable:$true] %s146_s4 }
  0x2b   : > { %p685_p3 = pnand %p761_p13, %p154_p9  ;;  %s494_s26 = scalar_lea.hbm %s681_s29, 256 }
  0x2c   : > { %p495_p4 = scmp.ne.s32.totalorder %s681_s29, %s494_s26  ;;  %s499_s28 = scalar_lea.hbm %s756_s1, 512 }
  0x2d   : > { %p500_p10 = scmp.lt.u32.totalorder %s681_s29, %s756_s1  ;;  %p501_p12 = scmp.lt.u32.totalorder %s499_s28, %s494_s26 }
  0x2e   : > { %p497_p5 = pnand %p495_p4, %p466_p11  ;;  %p503_p1 = scmp.lt.u32.totalorder %s494_s26, %s681_s29 }
  0x2f   : > { %p502_p0 = por %p501_p12, %p500_p10 }
  0x30   : > { %p498_p6 = pneg %p497_p5 }
  0x31   : > { %p504_p2 = por %p503_p1, %p502_p0 }
  0x33   : > { %p505_p9 = pnand %p504_p2, %p498_p6 }
  0x35   : > { %508 = shalt.err (!%p505_p9)
}
  0x36   : > { %s509_s20 = scalar_lea.vmem %s691_s4, 256  ;;  %s567_s7 = smov [#allocation4]  }
  0x37   : > { %p510_p13 = scmp.ne.s32.totalorder %s691_s4, %s509_s20  ;;  %s514_s8 = sshll.u32 %s567_s7, 4  ;;  %s515_s8 = int_to_ptr.vmem [resolvable:$false] %s514_s8 }
  0x38   : > { %s516_s9 = scalar_lea.vmem %s515_s8, 512  ;;  %p517_p7 = scmp.lt.s32.totalorder %s691_s4, %s515_s8 }
  0x39   : > { %p512_p4 = pnand %p510_p13, %p466_p11  ;;  %p518_p10 = scmp.lt.s32.totalorder %s516_s9, %s509_s20 }
  0x3b   : > { %p513_p5 = pneg %p512_p4  ;;  %p519_p12 = por %p518_p10, %p517_p7 }
  0x3d   : > { %p520_p0 = pnand %p519_p12, %p513_p5 }
  0x3f   : > { %523 = shalt.err (!%p520_p0)
}
  0x40   : > { %424 = dma.hbm_to_vmem [thread:$0]  (!%p639_p8), %s681_s29, 256, %s691_s4, %s136_s24, %s565_s16, %s565_s16, %s566_s22  }
  0x41   : > { %158 = sbr.rel (%p685_p3) target bundleno = 399 (0x18f), region = 28  ;;  %s160_s15 = sand.u32 (!%p685_p3), 1, %s554_s10  }
  0x42   : > { %s405_s23 = sshll.u32 (!%p685_p3), %s160_s15, 4  ;;  %s161_s25 = scalar_lea.sflag (!%p685_p3), [#allocation3], %s160_s15 }
  0x43   : > { %s164_s3 = scalar_lea.vmem (!%p685_p3), [#allocation2], %s405_s23  ;;  %p763_p7 = scmp.ne.s32.totalorder (!%p685_p3), %s759_s18, 0 }
  0x48   : > { %541 = dma.done.wait (%p763_p7), %s161_s25, 256  }
  0x49   : > { %543 = vsyncadd (%p763_p7), %s161_s25, 4294967040  ;;  %s170_s27 = scalar_lea.sflag [#allocation5], %s160_s15  ;;  %s173_s19 = scalar_lea.vmem [#allocation4], %s405_s23 }
  0x4a   : > { %545 = dma.done.wait (%p763_p7), %s170_s27, 256  }
  0x4b   : > { %547 = vsyncadd (%p763_p7), %s170_s27, 4294967040  ;;  %v217_v0 = vlaneseq  ;;  %v208_v1 = vld [vmem:[%s164_s3 + $0x8] sm:$0xff]  ;;  %v207_v3 = vld [vmem:[%s164_s3] sm:$0xff]  ;;  %vm263_vm8 = vcmask 7168   ;;  %vm266_vm9 = vcmask 15360   ;;  %vm269_vm10 = vcmask 23552  }
  0x4c   : > { %v212_v4 = vmax.f32 %v208_v1, 1e-06  ;;  %v211_v5 = vmax.f32 %v207_v3, 1e-06  ;;  %v210_v6 = vld [vmem:[%s173_s19 + $0x8] sm:$0xff]  ;;  %v209_v7 = vld [vmem:[%s173_s19] sm:$0xff] }
  0x4d   : > { %v218_v2 = vand.u32 127, %v217_v0  ;;  %v286_v34 = vshrl.u32 %v217_v0, 7  ;;  %s409_s18 = sshll.u32 %s602_s13, 4  ;;  %vm295_vm12 = vcmask 31744   ;;  %s407_s16 = sshll.u32 %s602_s13, 1 }
  0x4e   : > { %v214_v8 = vmin.f32 %v212_v4, 0.999999  ;;  %v213_v9 = vmin.f32 %v211_v5, 0.999999  ;;  %v288_v38 = vstv %s409_s18  ;;  %p202_p8 = scmp.lt.s32.totalorder %s407_s16, 3 }
  0x4f   : > { %vm230_vm0 = vcmp.ge.s32.totalorder %v218_v2, 32  ;;  %vm231_vm1 = vcmp.lt.s32.totalorder %v218_v2, 64  ;;  %vm220_vm2 = vcmp.lt.s32.totalorder %v218_v2, 32  ;;  %vm241_vm4 = vcmp.ge.s32.totalorder %v218_v2, 64 }
  0x50   : > { %v216_v10 = vmul.f32 %v214_v8, %v210_v6  ;;  %v215_v11 = vmul.f32 %v213_v9, %v209_v7  ;;  %vm232_vm3 = vmand %vm230_vm0, %vm231_vm1  ;;  %vm242_vm5 = vcmp.lt.s32.totalorder %v218_v2, 96  ;;  %vm252_vm7 = vcmp.ge.s32.totalorder %v218_v2, 96  ;;  %s769_s16 = smov (!%p202_p8, %s407_s16), 3 }
  0x51   : > { %vm243_vm6 = vmand %vm241_vm4, %vm242_vm5  ;;  %v287_v37 = vadd.s32 8, %v286_v34  ;;  %v289_v42 = vadd.s32 %v288_v38, %v286_v34  ;;  %s408_s22 = sshll.u32 %s769_s16, 3 }
  0x52   : > { %v225_v12 = vsel %vm220_vm2, %v216_v10, 0.0  ;;  %v224_v13 = vsel %vm220_vm2, %v215_v11, 0.0  ;;  %v236_v14 = vsel %vm232_vm3, %v216_v10, 0.0  ;;  %v235_v15 = vsel %vm232_vm3, %v215_v11, 0.0  ;;  %s205_s4 = scalar_lea.vmem %s757_s2, %s408_s22 }
  0x53   : > { %228 = vadd.xlane.f32.xlu1 %v225_v12  ;;  %226 = vadd.xlane.f32.xlu0 %v224_v13  ;;  %v247_v16 = vsel %vm243_vm6, %v216_v10, 0.0  ;;  %v246_v17 = vsel %vm243_vm6, %v215_v11, 0.0  ;;  %v258_v18 = vsel %vm252_vm7, %v216_v10, 0.0  ;;  %v257_v19 = vsel %vm252_vm7, %v215_v11, 0.0 }
  0x54   : > { %v290_v41 = vadd.s32 %v288_v38, %v287_v37  ;;  %vm291_vm13 = vcmp.lt.s32.totalorder %v289_v42, 25 }
  0x56   : > { %vm292_vm11 = vcmp.lt.s32.totalorder %v290_v41, 25 }
  0x57   : > { %239 = vadd.xlane.f32.xlu1 %v236_v14  ;;  %237 = vadd.xlane.f32.xlu0 %v235_v15 }
  0x5b   : > { %250 = vadd.xlane.f32.xlu1 %v247_v16  ;;  %248 = vadd.xlane.f32.xlu0 %v246_v17 }
  0x5f   : > { %261 = vadd.xlane.f32.xlu1 %v258_v18  ;;  %259 = vadd.xlane.f32.xlu0 %v257_v19 }
  0xe0   : > { %v229_v20 = vpop.xlane.xlu1 %228  ;;  %v227_v21 = vpop.xlane.xlu0 %226 }
  0xe4   : > { %v240_v22 = vpop.xlane.xlu1 %239  ;;  %v238_v23 = vpop.xlane.xlu0 %237 }
  0xe5   : > { %v265_v26 = vsel %vm263_vm8, %v229_v20, %v240_v22  ;;  %v264_v27 = vsel %vm263_vm8, %v227_v21, %v238_v23 }
  0xe8   : > { %v251_v24 = vpop.xlane.xlu1 %250  ;;  %v249_v25 = vpop.xlane.xlu0 %248 }
  0xe9   : > { %v268_v28 = vsel %vm266_vm9, %v265_v26, %v251_v24  ;;  %v267_v29 = vsel %vm266_vm9, %v264_v27, %v249_v25 }
  0xec   : > { %v262_v30 = vpop.xlane.xlu1 %261  ;;  %v260_v31 = vpop.xlane.xlu0 %259 }
  0xed   : > { %v271_v32 = vsel %vm269_vm10, %v268_v28, %v262_v30  ;;  %v270_v33 = vsel %vm269_vm10, %v267_v29, %v260_v31 }
  0xee   : > { %460 = vlog2.f32 %v271_v32  ;;  %v273_v35 = vsub.f32 1.0, %v271_v32  ;;  %v272_v36 = vsub.f32 1.0, %v270_v33 }
  0xef   : > { %462 = vlog2.f32 %v270_v33 }
  0xf0   : > { %v275_v39 = vmul.f32 %v273_v35, %v273_v35  ;;  %v274_v40 = vmul.f32 %v272_v36, %v272_v36 }
  0xf2   : > { %v277_v45 = vsub.f32 0.0, %v275_v39  ;;  %v276_v47 = vsub.f32 0.0, %v274_v40 }
  0xf8   : > { %v461_v43 = vpop.eup %460 }
  0xf9   : > { %v463_v44 = vpop.eup %462  ;;  %v281_v46 = vmul.f32 0.6931472, %v461_v43 }
  0xfa   : > { %v279_v48 = vmul.f32 0.6931472, %v463_v44 }
  0xfb   : > { %v283_v49 = vmul.f32 %v281_v46, %v277_v45 }
  0xfc   : > { %v282_v50 = vmul.f32 %v279_v48, %v276_v47 }
  0xfd   : > { %v294_v51 = vsel %vm292_vm11, %v283_v49, 0.0 }
  0xfe   : > { %v299_v52 = vsel %vm295_vm12, %v294_v51, 0.0  ;;  %v293_v53 = vsel %vm291_vm13, %v282_v50, 0.0 }
  0xff   : > { %300 = vadd.xlane.f32.xlu1 %v299_v52  ;;  %v296_v54 = vsel %vm295_vm12, %v293_v53, 0.0 }
 0x100   : > { %297 = vadd.xlane.f32.xlu0 %v296_v54 }
 0x18c   : > { %v301_v55 = vpop.xlane.xlu1 %300 }
 0x18d   : > { %v298_v56 = vpop.xlane.xlu0 %297  ;;  %303 = vst.msk [vmem:[%s205_s4 + $0x8] sm:$0xff] %vm263_vm8, %v301_v55 }
 0x18e   : > { %302 = vst.msk [vmem:[%s205_s4] sm:$0xff] %vm263_vm8, %v298_v56 }
 0x18f PF: > { %p15_p11 = scmp.ge.s32.totalorder %s605_s14, 4   ;;  %s764_s9 = smov %s554_s10 }
 0x190   : > { %s765_s10 = smov %s558_s11  ;;  %s766_s11 = smov %s615_s17 }
 0x191   : > { %s767_s12 = smov %s605_s14  ;;  %17 = sbr.rel (!%p15_p11) target bundleno = 5 (0x5), region = 81 }
 0x198   :  { %326 = vsyncpa [#allocation3], 1 }
 0x199   :  { %328 = vsyncpa [#allocation3 + $0x1], 1 }
 0x19a   :  { %329 = vsyncpa [#allocation5], 1 }
 0x19b   :  { %331 = vsyncpa [#allocation5 + $0x1], 1 }

</bundles_post_ra>
